<compile_context>
chip_gen: v7x
topology: tpu7x:2x2x1
jax: 0.10.0
libtpu: 0.0.40
codegen_flags: <defaults>
</compile_context>

<pallas_src>
from collections import namedtuple

import jax
import jax.numpy as jnp
from jax import lax
from jax.experimental import pallas as pl
from jax.experimental.pallas import tpu as pltpu

LossTuple = namedtuple("LossTuple",
                       ["zoom_loss", "az_cls_loss", "az_loc_loss", "total_loss"])

# ---- synthetic config (the source module does not define these hyperparams) ----
AZ_SIGMA = 1.0      # opt.az_sigma
NUM_ROIS = 8        # M: anchor regions produced by generate_az_rois
NUM_ADJ = 11        # K: adjacent sub-regions per ROI (AZ-Net convention)
C_IN = 4            # image channels
C_FEAT = 8          # extractor output channels
IMG_HW = 16         # spatial size

_LANE = 128

# ---- parameter-slab column offsets (every segment 128-lane aligned) ----
_P_CONVW = 0 * _LANE          # (C_FEAT, C_IN)   1x1 conv weight
_P_CONVB = 1 * _LANE          # (C_FEAT, 1)      1x1 conv bias
_P_WRT = 2 * _LANE            # (C_FEAT, 4)      ROI weight, stored transposed
_P_WH = 3 * _LANE             # (C_FEAT, 3*128)  packed head weights
_P_BIAS = 6 * _LANE           # (1, 3*128)       packed head biases (row 0)
_P_WIDTH = 9 * _LANE

# ---- head-output column offsets inside the (M, 3*128) heads block ----
_H_ZOOM = 0 * _LANE
_H_SCORE = 1 * _LANE
_H_LOC = 2 * _LANE

# ---- aux-slab column offsets ----
_A_ROIST = 0 * _LANE          # (4, M)   im_rois stored transposed
_A_ADJL = 1 * _LANE           # (M, K)   adjacency labels
_A_ZOOML = 2 * _LANE          # (M, 1)   zoom labels
_A_TGT = 3 * _LANE            # (M, 4K)  adjacency loc targets
_A_WGT = 4 * _LANE            # (M, 4K)  adjacency loc loss weights
_A_WIDTH = 5 * _LANE


def _pad_seg(a, rows, cols):
    """Zero-pad a 2-D array into a (rows, cols) lane-aligned slab segment."""
    r, c = a.shape
    return jnp.pad(a, ((0, rows - r), (0, cols - c)))


# =========================== fused Pallas kernel ===========================
def _az_fused_kernel(x_ref, p_ref, a_ref, loss_ref):
    k = NUM_ADJ
    kw = 4 * k

    # ---- extractor: 1x1 conv + ReLU as channel matmul on (Cin, H*W) ----
    conv_w = p_ref[:, _P_CONVW:_P_CONVW + C_IN]                 # (Cf, Cin)
    conv_b = p_ref[:, _P_CONVB:_P_CONVB + 1]                    # (Cf, 1)
    feat = jnp.maximum(
        jnp.dot(conv_w, x_ref[...], preferred_element_type=jnp.float32) + conv_b,
        0.0)                                                    # (Cf, HW) lane-dense

    # ---- AZ head: global-average pool on the XLU (lane reduce), kept as a
    # (Cf, 1) column so it broadcasts over ROI lanes with no transpose and no
    # extra MXU round trip on the critical path.
    pooled_col = jnp.sum(feat, axis=1, keepdims=True) * (1.0 / feat.shape[1])  # (Cf,1)

    # ROI embedding in transposed (Cf, M) orientation — independent of the conv
    # chain, so this MXU push overlaps with the conv matmul.
    wr_t = p_ref[:, _P_WRT:_P_WRT + 4]                          # (Cf, 4)
    rois_t = a_ref[0:4, _A_ROIST:_A_ROIST + NUM_ROIS]           # (4, M)
    h_t = jnp.maximum(
        jnp.dot(wr_t, rois_t, preferred_element_type=jnp.float32) + pooled_col,
        0.0)                                                    # (Cf, M)

    # Packed head matmul (transposed LHS): heads = h @ Wh = (h_t)^T @ Wh.
    # Output columns: [zoom @0 | adj_score @128 | adj_loc @256] (128-aligned).
    wh = p_ref[:, _P_WH:_P_WH + 3 * _LANE]                      # (Cf, 384)
    bias = p_ref[0:1, _P_BIAS:_P_BIAS + 3 * _LANE]              # (1, 384)
    heads = lax.dot_general(h_t, wh, (((0,), (0,)), ((), ())),
                            preferred_element_type=jnp.float32) + bias   # (M, 384)

    zoom_scores = heads[:, _H_ZOOM:_H_ZOOM + 1]                 # (M, 1)
    adj_scores = heads[:, _H_SCORE:_H_SCORE + k]                # (M, K)
    adj_bboxes = heads[:, _H_LOC:_H_LOC + kw]                   # (M, 4K)

    # ---- loss auxiliaries (tile-aligned slices of the aux slab) ----
    adj_labels = a_ref[:, _A_ADJL:_A_ADJL + k]                  # (M, K)
    zoom_labels = a_ref[:, _A_ZOOML:_A_ZOOML + 1]               # (M, 1)
    adj_targets = a_ref[:, _A_TGT:_A_TGT + kw]                  # (M, 4K)
    adj_loss_weight = a_ref[:, _A_WGT:_A_WGT + kw]              # (M, 4K)

    # ---- _fast_rcnn_loc_loss / _smooth_l1_loss ----
    # NOTE: the reference passes adj_loss_weight as gt_label, so both the
    # smooth-L1 weighting and the normalization count use adj_loss_weight.
    sigma2 = AZ_SIGMA * AZ_SIGMA
    diff = adj_loss_weight * (adj_bboxes - adj_targets)
    abs_diff = jnp.abs(diff)
    y = jnp.where(abs_diff < (1.0 / sigma2),
                  (sigma2 / 2.0) * diff * diff,
                  abs_diff - 0.5 / sigma2)
    loc_sum = jnp.sum(y)
    pos = jnp.sum((adj_loss_weight > 0.0).astype(jnp.float32))
    loc_loss = jnp.where(pos > 0.0, loc_sum / jnp.maximum(pos, 1.0) * 4.0, 0.0)

    # ---- binary_cross_entropy_with_logits (torch formula, mean reduction) ----
    def bce_mean(logits, targets):
        return jnp.mean(jnp.maximum(logits, 0.0) - logits * targets
                        + jnp.log1p(jnp.exp(-jnp.abs(logits))))

    cls_loss = bce_mean(adj_scores, adj_labels)
    zoom_loss = bce_mean(zoom_scores, zoom_labels)   # squeeze() vs (M,1): same mean

    loss_ref[0] = zoom_loss
    loss_ref[1] = cls_loss
    loss_ref[2] = loc_loss
    loss_ref[3] = zoom_loss + cls_loss + loc_loss


def run_az_fused(x, param_slab, aux_slab):
    cost = pl.CostEstimate(
        flops=2 * (C_FEAT * C_IN * x.shape[1]          # conv matmul
                   + C_FEAT * 4 * NUM_ROIS             # ROI matmul
                   + NUM_ROIS * C_FEAT * 3 * _LANE),   # packed head matmul
        transcendentals=2 * (NUM_ROIS * NUM_ADJ + NUM_ROIS),   # exp + log1p (BCE)
        bytes_accessed=4 * (x.size + param_slab.size + aux_slab.size + 4),
    )
    return pl.pallas_call(
        _az_fused_kernel,
        out_shape=jax.ShapeDtypeStruct((4,), jnp.float32),
        in_specs=[pl.BlockSpec(memory_space=pltpu.MemorySpace.VMEM)] * 3,
        out_specs=pl.BlockSpec(memory_space=pltpu.MemorySpace.SMEM),
        compiler_params=pltpu.CompilerParams(vmem_limit_bytes=4 << 20),
        cost_estimate=cost,
    )(x, param_slab, aux_slab)


# =========================== plain-JAX glue ===========================
def generate_az_rois(size, bboxes):
    # TODO(synk): the real generate_az_rois (AZ-Net region pyramid + adjacency
    # target assignment) is not defined in the source; synthesize deterministic
    # labels / targets / weights of the right shapes from the gt boxes.
    h, w = size
    m, k = NUM_ROIS, NUM_ADJ
    idx = jnp.arange(m, dtype=jnp.float32)
    x1 = (idx % 4) * (w / 4.0)
    y1 = jnp.floor(idx / 4) * (h / 4.0)
    im_rois = jnp.stack([x1, y1, x1 + w / 4.0, y1 + h / 4.0], axis=1)      # (M, 4)

    seed = jnp.floor(jnp.mean(bboxes))  # deterministic dependence on gt boxes
    grid = jnp.arange(m * k, dtype=jnp.float32).reshape(m, k)
    adj_labels = ((grid + seed) % 3.0 == 0.0).astype(jnp.float32)           # (M, K)
    zoom_labels = ((idx + seed) % 2.0 == 0.0).astype(jnp.float32)           # (M,)
    tgrid = jnp.arange(m * 4 * k, dtype=jnp.float32).reshape(m, 4 * k)
    adj_targets = jnp.sin(tgrid * 0.1) * 0.5                                # (M, 4K)
    adj_loss_weight = jnp.repeat(adj_labels, 4, axis=1)                     # (M, 4K)
    return adj_labels, zoom_labels, im_rois, adj_targets, adj_loss_weight


def init_params(key):
    ks = jax.random.split(key, 6)
    s = 0.1
    conv_w = s * jax.random.normal(ks[0], (C_FEAT, C_IN), jnp.float32)
    conv_b = s * jax.random.normal(ks[1], (C_FEAT, 1), jnp.float32)
    wr = s * jax.random.normal(ks[2], (4, C_FEAT), jnp.float32)
    wz = s * jax.random.normal(ks[3], (C_FEAT, 1), jnp.float32)
    ws = s * jax.random.normal(ks[4], (C_FEAT, NUM_ADJ), jnp.float32)
    wl = s * jax.random.normal(ks[5], (C_FEAT, 4 * NUM_ADJ), jnp.float32)
    bz = jnp.zeros((1, 1), jnp.float32)
    bs = jnp.zeros((1, NUM_ADJ), jnp.float32)
    bl = jnp.zeros((1, 4 * NUM_ADJ), jnp.float32)

    # One lane-dense parameter slab; every segment starts on a 128-lane
    # boundary so all in-kernel slices are tile-aligned, and the whole
    # parameter set is a single HBM->VMEM DMA descriptor.
    wh = jnp.concatenate([_pad_seg(wz, C_FEAT, _LANE),
                          _pad_seg(ws, C_FEAT, _LANE),
                          _pad_seg(wl, C_FEAT, _LANE)], axis=1)            # (Cf, 384)
    bh = jnp.concatenate([_pad_seg(bz, 1, _LANE),
                          _pad_seg(bs, 1, _LANE),
                          _pad_seg(bl, 1, _LANE)], axis=1)                 # (1, 384)
    param_slab = jnp.concatenate([
        _pad_seg(conv_w, C_FEAT, _LANE),          # @_P_CONVW
        _pad_seg(conv_b, C_FEAT, _LANE),          # @_P_CONVB
        _pad_seg(wr.T, C_FEAT, _LANE),            # @_P_WRT  (pre-transposed)
        wh,                                       # @_P_WH
        _pad_seg(bh, C_FEAT, 3 * _LANE),          # @_P_BIAS (row 0)
    ], axis=1)                                    # (Cf, 1152)
    assert param_slab.shape == (C_FEAT, _P_WIDTH)
    return {"param_slab": param_slab}


def az_train_forward(params, imgs, bboxes, labels, scale):
    """Mirrors AZ_train.forward(imgs, bboxes, labels, scale)."""
    del labels, scale  # unused by the reference forward's loss computation
    n, cin, h, w = imgs.shape
    # Reference forward uses bboxes[0]/labels[0] -> effectively batch 1.
    # TODO(synk): for batch > 1, stack batches into the sublane dim (v5e/v6e)
    # or add a leading "parallel" grid axis so v7x's 2nd TensorCore gets work.
    x = imgs[0].reshape(cin, h * w).astype(jnp.float32)   # free reshape, no transpose

    (adj_labels, zoom_labels, im_rois,
     adj_targets, adj_loss_weight) = generate_az_rois((h, w), bboxes[0])

    # One lane-dense per-step aux slab (rois + loss targets); each segment is
    # 128-lane aligned -> a single DMA and tile-aligned in-kernel slices.
    aux_slab = jnp.concatenate([
        _pad_seg(im_rois.T, NUM_ROIS, _LANE),                    # @_A_ROIST
        _pad_seg(adj_labels, NUM_ROIS, _LANE),                   # @_A_ADJL
        _pad_seg(zoom_labels.reshape(-1, 1), NUM_ROIS, _LANE),   # @_A_ZOOML
        _pad_seg(adj_targets, NUM_ROIS, _LANE),                  # @_A_TGT
        _pad_seg(adj_loss_weight, NUM_ROIS, _LANE),              # @_A_WGT
    ], axis=1)                                                   # (M, 640)

    losses4 = run_az_fused(x, params["param_slab"], aux_slab)

    losses = LossTuple(losses4[0], losses4[1], losses4[2], losses4[3])
    return losses, zoom_labels, im_rois


if __name__ == "__main__":
    key = jax.random.PRNGKey(0)
    k_img, k_box, k_param = jax.random.split(key, 3)

    imgs = jax.random.normal(k_img, (1, C_IN, IMG_HW, IMG_HW), jnp.float32)  # NCHW
    bboxes = jnp.abs(jax.random.normal(k_box, (1, 3, 4), jnp.float32)) * 8.0
    labels = jnp.array([[1, 2, 3]], jnp.int32)
    scale = 1.0

    params = init_params(k_param)

    losses, zoom_labels, im_rois = jax.jit(az_train_forward)(
        params, imgs, bboxes, labels, scale)
    jax.block_until_ready(losses.total_loss)
    jax.block_until_ready(zoom_labels)
    jax.block_until_ready(im_rois)

    # sanity: finite scalar losses, correct aux shapes, total == sum of parts
    assert jnp.isfinite(losses.total_loss)
    assert jnp.allclose(losses.total_loss,
                        losses.zoom_loss + losses.az_cls_loss + losses.az_loc_loss,
                        rtol=1e-5, atol=1e-6)
    assert zoom_labels.shape == (NUM_ROIS,)
    assert im_rois.shape == (NUM_ROIS, 4)
    print("KERNEL_OK")
</pallas_src>

<mosaic_0001>
module attributes {stable_mosaic.version = 11 : i64} {
  func.func @_az_fused_kernel(%arg0: memref<4x256xf32, #tpu.memory_space<vmem>>, %arg1: memref<8x1152xf32, #tpu.memory_space<vmem>>, %arg2: memref<8x640xf32, #tpu.memory_space<vmem>>, %arg3: memref<4xf32, #tpu.memory_space<smem>>) attributes {dimension_semantics = [], scalar_prefetch = 0 : i64, scratch_operands = 0 : i64, tpu.core_type = #tpu.core_type<tc>} {
    %c0 = arith.constant 0 : index
    %c0_0 = arith.constant 0 : index
    %0 = vector.load %arg1[%c0, %c0_0] : memref<8x1152xf32, #tpu.memory_space<vmem>>, vector<8x4xf32>
    %c0_1 = arith.constant 0 : index
    %c128 = arith.constant 128 : index
    %1 = vector.load %arg1[%c0_1, %c128] : memref<8x1152xf32, #tpu.memory_space<vmem>>, vector<8x1xf32>
    %c0_2 = arith.constant 0 : index
    %c0_3 = arith.constant 0 : index
    %2 = vector.load %arg0[%c0_2, %c0_3] : memref<4x256xf32, #tpu.memory_space<vmem>>, vector<4x256xf32>
    %cst = arith.constant dense<0.000000e+00> : vector<8x256xf32>
    %3 = tpu.matmul %0, %2, %cst {dimension_numbers = #tpu.dot_dimension_numbers<[1], [0], [0], [1], [0, 0, 1, 1], [], []>} : vector<8x4xf32>, vector<4x256xf32>, vector<8x256xf32> -> vector<8x256xf32>
    %4 = vector.broadcast %1 : vector<8x1xf32> to vector<8x256xf32>
    %5 = arith.addf %3, %4 : vector<8x256xf32>
    %cst_4 = arith.constant 0.000000e+00 : f32
    %6 = vector.broadcast %cst_4 : f32 to vector<8x256xf32>
    %7 = arith.maximumf %5, %6 : vector<8x256xf32>
    %cst_5 = arith.constant dense<0.000000e+00> : vector<8xf32>
    %8 = vector.multi_reduction <add>, %7, %cst_5 [1] : vector<8x256xf32> to vector<8xf32>
    %9 = vector.shape_cast %8 : vector<8xf32> to vector<8x1xf32>
    %cst_6 = arith.constant 3.906250e-03 : f32
    %10 = vector.broadcast %cst_6 : f32 to vector<8x1xf32>
    %11 = arith.mulf %9, %10 : vector<8x1xf32>
    %c0_7 = arith.constant 0 : index
    %c256 = arith.constant 256 : index
    %12 = vector.load %arg1[%c0_7, %c256] : memref<8x1152xf32, #tpu.memory_space<vmem>>, vector<8x4xf32>
    %c0_8 = arith.constant 0 : index
    %c0_9 = arith.constant 0 : index
    %13 = vector.load %arg2[%c0_8, %c0_9] : memref<8x640xf32, #tpu.memory_space<vmem>>, vector<4x8xf32>
    %cst_10 = arith.constant dense<0.000000e+00> : vector<8x8xf32>
    %14 = tpu.matmul %12, %13, %cst_10 {dimension_numbers = #tpu.dot_dimension_numbers<[1], [0], [0], [1], [0, 0, 1, 1], [], []>} : vector<8x4xf32>, vector<4x8xf32>, vector<8x8xf32> -> vector<8x8xf32>
    %15 = vector.broadcast %11 : vector<8x1xf32> to vector<8x8xf32>
    %16 = arith.addf %14, %15 : vector<8x8xf32>
    %cst_11 = arith.constant 0.000000e+00 : f32
    %17 = vector.broadcast %cst_11 : f32 to vector<8x8xf32>
    %18 = arith.maximumf %16, %17 : vector<8x8xf32>
    %c0_12 = arith.constant 0 : index
    %c384 = arith.constant 384 : index
    %19 = vector.load %arg1[%c0_12, %c384] : memref<8x1152xf32, #tpu.memory_space<vmem>>, vector<8x384xf32>
    %c0_13 = arith.constant 0 : index
    %c768 = arith.constant 768 : index
    %20 = vector.load %arg1[%c0_13, %c768] : memref<8x1152xf32, #tpu.memory_space<vmem>>, vector<1x384xf32>
    %cst_14 = arith.constant dense<0.000000e+00> : vector<8x384xf32>
    %21 = tpu.matmul %18, %19, %cst_14 {dimension_numbers = #tpu.dot_dimension_numbers<[0], [0], [1], [1], [0, 1, 1, 1], [], []>} : vector<8x8xf32>, vector<8x384xf32>, vector<8x384xf32> -> vector<8x384xf32>
    %22 = vector.broadcast %20 : vector<1x384xf32> to vector<8x384xf32>
    %23 = arith.addf %21, %22 : vector<8x384xf32>
    %24 = vector.extract_strided_slice %23 {offsets = [0, 0], sizes = [8, 1], strides = [1, 1]} : vector<8x384xf32> to vector<8x1xf32>
    %25 = vector.extract_strided_slice %23 {offsets = [0, 128], sizes = [8, 11], strides = [1, 1]} : vector<8x384xf32> to vector<8x11xf32>
    %26 = vector.extract_strided_slice %23 {offsets = [0, 256], sizes = [8, 44], strides = [1, 1]} : vector<8x384xf32> to vector<8x44xf32>
    %c0_15 = arith.constant 0 : index
    %c128_16 = arith.constant 128 : index
    %27 = vector.load %arg2[%c0_15, %c128_16] : memref<8x640xf32, #tpu.memory_space<vmem>>, vector<8x11xf32>
    %c0_17 = arith.constant 0 : index
    %c256_18 = arith.constant 256 : index
    %28 = vector.load %arg2[%c0_17, %c256_18] : memref<8x640xf32, #tpu.memory_space<vmem>>, vector<8x1xf32>
    %c0_19 = arith.constant 0 : index
    %c384_20 = arith.constant 384 : index
    %29 = vector.load %arg2[%c0_19, %c384_20] : memref<8x640xf32, #tpu.memory_space<vmem>>, vector<8x44xf32>
    %c0_21 = arith.constant 0 : index
    %c512 = arith.constant 512 : index
    %30 = vector.load %arg2[%c0_21, %c512] : memref<8x640xf32, #tpu.memory_space<vmem>>, vector<8x44xf32>
    %31 = arith.subf %26, %29 : vector<8x44xf32>
    %32 = arith.mulf %30, %31 : vector<8x44xf32>
    %33 = math.absf %32 : vector<8x44xf32>
    %cst_22 = arith.constant 1.000000e+00 : f32
    %34 = vector.broadcast %cst_22 : f32 to vector<8x44xf32>
    %35 = arith.cmpf olt, %33, %34 : vector<8x44xf32>
    %cst_23 = arith.constant 5.000000e-01 : f32
    %36 = vector.broadcast %cst_23 : f32 to vector<8x44xf32>
    %37 = arith.mulf %36, %32 : vector<8x44xf32>
    %38 = arith.mulf %37, %32 : vector<8x44xf32>
    %cst_24 = arith.constant 5.000000e-01 : f32
    %39 = vector.broadcast %cst_24 : f32 to vector<8x44xf32>
    %40 = arith.subf %33, %39 : vector<8x44xf32>
    %41 = arith.select %35, %38, %40 : vector<8x44xi1>, vector<8x44xf32>
    %42 = vector.shape_cast %41 : vector<8x44xf32> to vector<1x8x44xf32>
    %cst_25 = arith.constant dense<0.000000e+00> : vector<1xf32>
    %43 = vector.multi_reduction <add>, %42, %cst_25 [1, 2] : vector<1x8x44xf32> to vector<1xf32>
    %44 = vector.shape_cast %43 : vector<1xf32> to vector<1x1x1xf32>
    %45 = vector.extract %44[0, 0, 0] : f32 from vector<1x1x1xf32>
    %cst_26 = arith.constant 0.000000e+00 : f32
    %46 = vector.broadcast %cst_26 : f32 to vector<8x44xf32>
    %47 = arith.cmpf ogt, %30, %46 : vector<8x44xf32>
    %48 = arith.extui %47 : vector<8x44xi1> to vector<8x44xi32>
    %49 = arith.sitofp %48 : vector<8x44xi32> to vector<8x44xf32>
    %50 = vector.shape_cast %49 : vector<8x44xf32> to vector<1x8x44xf32>
    %cst_27 = arith.constant dense<0.000000e+00> : vector<1xf32>
    %51 = vector.multi_reduction <add>, %50, %cst_27 [1, 2] : vector<1x8x44xf32> to vector<1xf32>
    %52 = vector.shape_cast %51 : vector<1xf32> to vector<1x1x1xf32>
    %53 = vector.extract %52[0, 0, 0] : f32 from vector<1x1x1xf32>
    %cst_28 = arith.constant 0.000000e+00 : f32
    %54 = arith.cmpf ogt, %53, %cst_28 : f32
    %cst_29 = arith.constant 1.000000e+00 : f32
    %55 = arith.maximumf %53, %cst_29 : f32
    %56 = arith.divf %45, %55 : f32
    %cst_30 = arith.constant 4.000000e+00 : f32
    %57 = arith.mulf %56, %cst_30 : f32
    %cst_31 = arith.constant 0.000000e+00 : f32
    %58 = arith.select %54, %57, %cst_31 : f32
    %cst_32 = arith.constant 0.000000e+00 : f32
    %59 = vector.broadcast %cst_32 : f32 to vector<8x11xf32>
    %60 = arith.maximumf %25, %59 : vector<8x11xf32>
    %61 = arith.mulf %25, %27 : vector<8x11xf32>
    %62 = arith.subf %60, %61 : vector<8x11xf32>
    %63 = math.absf %25 : vector<8x11xf32>
    %cst_33 = arith.constant 0.000000e+00 : f32
    %64 = vector.broadcast %cst_33 : f32 to vector<8x11xf32>
    %65 = arith.subf %64, %63 : vector<8x11xf32>
    %66 = math.exp %65 : vector<8x11xf32>
    %67 = math.log1p %66 : vector<8x11xf32>
    %68 = arith.addf %62, %67 : vector<8x11xf32>
    %69 = vector.shape_cast %68 : vector<8x11xf32> to vector<1x8x11xf32>
    %cst_34 = arith.constant dense<0.000000e+00> : vector<1xf32>
    %70 = vector.multi_reduction <add>, %69, %cst_34 [1, 2] : vector<1x8x11xf32> to vector<1xf32>
    %71 = vector.shape_cast %70 : vector<1xf32> to vector<1x1x1xf32>
    %72 = vector.extract %71[0, 0, 0] : f32 from vector<1x1x1xf32>
    %cst_35 = arith.constant 8.800000e+01 : f32
    %73 = arith.divf %72, %cst_35 : f32
    %cst_36 = arith.constant 0.000000e+00 : f32
    %74 = vector.broadcast %cst_36 : f32 to vector<8x1xf32>
    %75 = arith.maximumf %24, %74 : vector<8x1xf32>
    %76 = arith.mulf %24, %28 : vector<8x1xf32>
    %77 = arith.subf %75, %76 : vector<8x1xf32>
    %78 = math.absf %24 : vector<8x1xf32>
    %cst_37 = arith.constant 0.000000e+00 : f32
    %79 = vector.broadcast %cst_37 : f32 to vector<8x1xf32>
    %80 = arith.subf %79, %78 : vector<8x1xf32>
    %81 = math.exp %80 : vector<8x1xf32>
    %82 = math.log1p %81 : vector<8x1xf32>
    %83 = arith.addf %77, %82 : vector<8x1xf32>
    %84 = vector.shape_cast %83 : vector<8x1xf32> to vector<1x8x1xf32>
    %cst_38 = arith.constant dense<0.000000e+00> : vector<1xf32>
    %85 = vector.multi_reduction <add>, %84, %cst_38 [1, 2] : vector<1x8x1xf32> to vector<1xf32>
    %86 = vector.shape_cast %85 : vector<1xf32> to vector<1x1x1xf32>
    %87 = vector.extract %86[0, 0, 0] : f32 from vector<1x1x1xf32>
    %cst_39 = arith.constant 8.000000e+00 : f32
    %88 = arith.divf %87, %cst_39 : f32
    %c0_40 = arith.constant 0 : index
    %89 = memref.load %arg3[%c0_40] : memref<4xf32, #tpu.memory_space<smem>>
    memref.store %88, %arg3[%c0_40] : memref<4xf32, #tpu.memory_space<smem>>
    %c1 = arith.constant 1 : index
    %90 = memref.load %arg3[%c1] : memref<4xf32, #tpu.memory_space<smem>>
    memref.store %73, %arg3[%c1] : memref<4xf32, #tpu.memory_space<smem>>
    %c2 = arith.constant 2 : index
    %91 = memref.load %arg3[%c2] : memref<4xf32, #tpu.memory_space<smem>>
    memref.store %58, %arg3[%c2] : memref<4xf32, #tpu.memory_space<smem>>
    %92 = arith.addf %88, %73 : f32
    %93 = arith.addf %92, %58 : f32
    %c3 = arith.constant 3 : index
    %94 = memref.load %arg3[%c3] : memref<4xf32, #tpu.memory_space<smem>>
    memref.store %93, %arg3[%c3] : memref<4xf32, #tpu.memory_space<smem>>
    return
  }
}

</mosaic_0001>

<bundles_post_ra>
// kernel: squeeze.6
= control target key start
LH: loop header
LB: loop body
LE: loop exit
PB: predicated region body
PF: predicated region fallthrough
CT: control target
= control target key end

     0   :  { %2 = vsyncpa [#allocation1], 0  ;;  %s237_s6 = smov [#allocation0]   ;;  %s295_s0 = inlined_call_operand.hbm [shape: f32[1,4,16,16], index: 0, kind: input, shape index: {}]   ;;  %s296_s1 = inlined_call_operand.vmem [shape: f32[4,256], index: 1, kind: output, shape index: {}]  }
   0x1   :  { %s7_s7 = sshll.u32 %s237_s6, 4  ;;  %s213_s10 = scalar_lea.hbm %s295_s0, 1024  ;;  %s8_s7 = int_to_ptr.vmem [resolvable:$true] %s7_s7 }
   0x2   :  { %p214_p0 = scmp.ne.s32.totalorder %s295_s0, %s213_s10  ;;  %p217_p1 = scmp.lt.u32.totalorder %s213_s10, %s295_s0 }
   0x4   :  { %p219_p2 = pnand %p217_p1, %p214_p0 }
   0x6   :  { %222 = shalt.err (!%p219_p2)
}
   0x7   :  { %s223_s15 = scalar_lea.vmem %s8_s7, 1024  ;;  %p228_p4 = scmp.lt.s32.totalorder %s8_s7, %s8_s7 }
   0x8   :  { %p224_p3 = scmp.ne.s32.totalorder %s8_s7, %s223_s15  ;;  %p229_p5 = scmp.lt.s32.totalorder %s223_s15, %s223_s15 }
   0xa   :  { %p230_p6 = por %p229_p5, %p228_p4 }
   0xc   :  { %p231_p7 = pnand %p230_p6, %p224_p3 }
   0xe   :  { %234 = shalt.err (!%p231_p7)
}
   0xf   :  { %10 = dma.hbm_to_vmem [thread:$0]  %s295_s0, 1024, %s8_s7, [#allocation1]  }
  0x10   :  { %235 = dma.done.wait [#allocation1], 1024  }
  0x11   :  { %236 = vsyncadd [#allocation1], 4294966272  ;;  %s25_s0 = smov 3  ;;  %s28_s18 = smov 12  ;;  %vm30_vm0 = vcmask 1043458   ;;  %vm35_vm1 = vcmask 1045508  }
  0x12   :  { %s33_s19 = smov 48  ;;  %s38_s20 = smov 192  ;;  %vm40_vm2 = vcmask 1047558   ;;  %v26_v0 = vld [vmem:[#allocation0 + $0x7] ss:$16 sm:%s25_s0]   ;;  %vm14_vm3 = vcmask 1047556  }
  0x13   :  { %s73_s21 = smov 3  ;;  %s76_s22 = smov 12  ;;  %v29_v1 = vld [vmem:[#allocation0 + $0x7] ss:$16 sm:%s28_s18]   ;;  %v34_v2 = vld [vmem:[#allocation0 - $0x31] ss:$16 sm:%s33_s19]  }
  0x14   :  { %s81_s23 = smov 48  ;;  %s86_s24 = smov 192  ;;  %v31_v3 = vsel %vm30_vm0, %v29_v1, %v26_v0  ;;  %v39_v4 = vld [vmem:[#allocation0 - $0x31] ss:$16 sm:%s38_s20]   ;;  %v74_v5 = vld [vmem:[#allocation0 + $0x5] ss:$16 sm:%s73_s21]  }
  0x15   :  { %s49_s25 = smov 3  ;;  %s52_s26 = smov 12  ;;  %v77_v6 = vld [vmem:[#allocation0 + $0x5] ss:$16 sm:%s76_s22]   ;;  %v36_v7 = vsel %vm35_vm1, %v34_v2, %v31_v3  ;;  %v82_v9 = vld [vmem:[#allocation0 - $0x33] ss:$16 sm:%s81_s23]  }
  0x16   :  { %s57_s27 = smov 48  ;;  %s62_s28 = smov 192  ;;  %v79_v8 = vsel %vm30_vm0, %v77_v6, %v74_v5  ;;  %v87_v10 = vld [vmem:[#allocation0 - $0x33] ss:$16 sm:%s86_s24]   ;;  %v50_v11 = vld [vmem:[#allocation0 + $0x6] ss:$16 sm:%s49_s25]   ;;  %v41_v12 = vsel %vm40_vm2, %v39_v4, %v36_v7 }
  0x17   :  { %v84_v13 = vsel %vm35_vm1, %v82_v9, %v79_v8  ;;  %v53_v14 = vld [vmem:[#allocation0 + $0x6] ss:$16 sm:%s52_s26]   ;;  %v58_v15 = vld [vmem:[#allocation0 - $0x32] ss:$16 sm:%s57_s27]   ;;  %s238_s29 = smov 112   ;;  %s97_s30 = smov 3 }
  0x18   :  { %v63_v16 = vld [vmem:[#allocation0 - $0x32] ss:$16 sm:%s62_s28]   ;;  %42 = vrot.lane.b32.xlu0 %v41_v12, %s238_s29  ;;  %v89_v17 = vsel %vm40_vm2, %v87_v10, %v84_v13  ;;  %v55_v18 = vsel %vm30_vm0, %v53_v14, %v50_v11  ;;  %s239_s2 = smov 80   ;;  %v98_v20 = vld [vmem:[#allocation0 + $0x4] ss:$16 sm:%s97_s30]   ;;  %s100_s3 = smov 12 }
  0x19   :  { %90 = vrot.lane.b32.xlu1 %v89_v17, %s239_s2  ;;  %v60_v19 = vsel %vm35_vm1, %v58_v15, %v55_v18  ;;  %s105_s4 = smov 48  ;;  %v101_v22 = vld [vmem:[#allocation0 + $0x4] ss:$16 sm:%s100_s3]   ;;  %s110_s5 = smov 192  ;;  %vm16_vm4 = vcmask 130048   ;;  %vm44_vm5 = vcmask 1048448  }
  0x1a   :  { %v65_v21 = vsel %vm40_vm2, %v63_v16, %v60_v19  ;;  %v106_v23 = vld [vmem:[#allocation0 - $0x34] ss:$16 sm:%s105_s4]   ;;  %v103_v24 = vsel %vm30_vm0, %v101_v22, %v98_v20  ;;  %s121_s6 = smov 3  ;;  %s124_s7 = smov 12  ;;  %vm68_vm6 = vcmask 917248   ;;  %vm92_vm7 = vcmask 786048  }
  0x1b   :  { %v111_v25 = vld [vmem:[#allocation0 - $0x34] ss:$16 sm:%s110_s5]   ;;  %s240_s8 = smov 96   ;;  %v108_v26 = vsel %vm35_vm1, %v106_v23, %v103_v24  ;;  %v122_v27 = vld [vmem:[#allocation0 + $0x3] ss:$16 sm:%s121_s6]   ;;  %s129_s9 = smov 48 }
  0x1c   :  { %66 = vrot.lane.b32.xlu0 %v65_v21, %s240_s8  ;;  %v125_v28 = vld [vmem:[#allocation0 + $0x3] ss:$16 sm:%s124_s7]   ;;  %s134_s10 = smov 192  ;;  %v113_v29 = vsel %vm40_vm2, %v111_v25, %v108_v26  ;;  %v130_v31 = vld [vmem:[#allocation0 - $0x35] ss:$16 sm:%s129_s9]   ;;  %s145_s11 = smov 3 }
  0x1d   :  { %v127_v30 = vsel %vm30_vm0, %v125_v28, %v122_v27  ;;  %v135_v32 = vld [vmem:[#allocation0 - $0x35] ss:$16 sm:%s134_s10]   ;;  %s241_s12 = smov 64   ;;  %v146_v34 = vld [vmem:[#allocation0 + $0x2] ss:$16 sm:%s145_s11]   ;;  %s148_s13 = smov 12 }
  0x1e   :  { %114 = vrot.lane.b32.xlu1 %v113_v29, %s241_s12  ;;  %v132_v33 = vsel %vm35_vm1, %v130_v31, %v127_v30  ;;  %s153_s14 = smov 48  ;;  %v149_v36 = vld [vmem:[#allocation0 + $0x2] ss:$16 sm:%s148_s13]   ;;  %s158_s15 = smov 192  ;;  %vm116_vm8 = vcmask 654848   ;;  %vm140_vm9 = vcmask 523648  }
  0x1f   :  { %v137_v35 = vsel %vm40_vm2, %v135_v32, %v132_v33  ;;  %v154_v37 = vld [vmem:[#allocation0 - $0x36] ss:$16 sm:%s153_s14]   ;;  %v12_v38 = vld [vmem:[#allocation0] ss:$8 sm:$0xf]   ;;  %s242_s16 = smov 48   ;;  %v151_v39 = vsel %vm30_vm0, %v149_v36, %v146_v34 }
  0x20   :  { %138 = vrot.lane.b32.xlu0 %v137_v35, %s242_s16  ;;  %v159_v40 = vld [vmem:[#allocation0 - $0x36] ss:$16 sm:%s158_s15]   ;;  %s169_s17 = smov 3  ;;  %s172_s0 = smov 12  ;;  %v156_v41 = vsel %vm35_vm1, %v154_v37, %v151_v39  ;;  %vm164_vm10 = vcmask 392448   ;;  %vm188_vm11 = vcmask 261248  }
  0x21   :  { %v170_v42 = vld [vmem:[#allocation0 + $0x1] ss:$16 sm:%s169_s17]   ;;  %s177_s18 = smov 48  ;;  %s182_s19 = smov 192  ;;  %v161_v44 = vsel %vm40_vm2, %v159_v40, %v156_v41 }
  0x22   :  { %v173_v43 = vld [vmem:[#allocation0 + $0x1] ss:$16 sm:%s172_s0]   ;;  %v178_v46 = vld [vmem:[#allocation0 - $0x37] ss:$16 sm:%s177_s18]   ;;  %s243_s20 = smov 32   ;;  %s244_s21 = smov 16  }
  0x23   :  { %v175_v45 = vsel %vm30_vm0, %v173_v43, %v170_v42  ;;  %v183_v47 = vld [vmem:[#allocation0 - $0x37] ss:$16 sm:%s182_s19]   ;;  %162 = vrot.lane.b32.xlu1 %v161_v44, %s243_s20  ;;  %v13_v49 = vld [vmem:[#allocation0] ss:$8 sm:$0xf0]  }
  0x24   :  { %v180_v48 = vsel %vm35_vm1, %v178_v46, %v175_v45  ;;  %v15_v51 = vsel %vm14_vm3, %v13_v49, %v12_v38 }
  0x25   :  { %v185_v50 = vsel %vm40_vm2, %v183_v47, %v180_v48  ;;  %17 = vst.msk [vmem:[#allocation2] ss:$8 sm:$0x3] %vm16_vm4, %v15_v51   ;;  %19 = vst.msk [vmem:[#allocation2 - $0xf] ss:$8 sm:$0xc] %vm16_vm4, %v15_v51  }
  0x26   :  { %186 = vrot.lane.b32.xlu0 %v185_v50, %s244_s21  ;;  %21 = vst.msk [vmem:[#allocation2 - $0x1e] ss:$8 sm:$0x30] %vm16_vm4, %v15_v51   ;;  %23 = vst.msk [vmem:[#allocation2 - $0x2d] ss:$8 sm:$0xc0] %vm16_vm4, %v15_v51  }
  0x8a   :  { %v43_v52 = vpop.permute.xlu0 %42  }
  0x8b   :  { %v91_v53 = vpop.permute.xlu1 %90   ;;  %45 = vst.msk [vmem:[#allocation2] sm:$0xf] %vm44_vm5, %v43_v52   ;;  %47 = vst.msk [vmem:[#allocation2 + $0x4] sm:$0xf0] %vm44_vm5, %v43_v52  }
  0x8e   :  { %v67_v54 = vpop.permute.xlu0 %66  }
  0x8f   :  { %69 = vst.msk [vmem:[#allocation2] sm:$0xf] %vm68_vm6, %v67_v54   ;;  %71 = vst.msk [vmem:[#allocation2 + $0x4] sm:$0xf0] %vm68_vm6, %v67_v54  }
  0x90   :  { %93 = vst.msk [vmem:[#allocation2] sm:$0xf] %vm92_vm7, %v91_v53   ;;  %95 = vst.msk [vmem:[#allocation2 + $0x4] sm:$0xf0] %vm92_vm7, %v91_v53   ;;  %v115_v55 = vpop.permute.xlu1 %114  }
  0x91   :  { %117 = vst.msk [vmem:[#allocation2] sm:$0xf] %vm116_vm8, %v115_v55   ;;  %119 = vst.msk [vmem:[#allocation2 + $0x4] sm:$0xf0] %vm116_vm8, %v115_v55  }
  0x92   :  { %v139_v56 = vpop.permute.xlu0 %138  }
  0x93   :  { %141 = vst.msk [vmem:[#allocation2] sm:$0xf] %vm140_vm9, %v139_v56   ;;  %143 = vst.msk [vmem:[#allocation2 + $0x4] sm:$0xf0] %vm140_vm9, %v139_v56  }
  0x95   :  { %v163_v57 = vpop.permute.xlu1 %162  }
  0x96   :  { %165 = vst.msk [vmem:[#allocation2] sm:$0xf] %vm164_vm10, %v163_v57   ;;  %167 = vst.msk [vmem:[#allocation2 + $0x4] sm:$0xf0] %vm164_vm10, %v163_v57  }
  0x98   :  { %v187_v58 = vpop.permute.xlu0 %186  }
  0x99   :  { %189 = vst.msk [vmem:[#allocation2] sm:$0xf] %vm188_vm11, %v187_v58   ;;  %191 = vst.msk [vmem:[#allocation2 + $0x4] sm:$0xf0] %vm188_vm11, %v187_v58  }
  0xa0   :  { %v195_v59 = vld [vmem:[#allocation2] sm:$0xf]  ;;  %v199_v60 = vld [vmem:[#allocation2 + $0x8] sm:$0xf] }
  0xa1   :  { %197 = vst [vmem:[%s296_s1] sm:$0xf] %v195_v59  ;;  %204 = vst [vmem:[%s296_s1 + $0x4] sm:$0xf] %v199_v60 }
  0xa2   :  { %203 = vsyncpa [#allocation1], 1 }

// kernel: az_train_forward.1
= control target key start
LH: loop header
LB: loop body
LE: loop exit
PB: predicated region body
PF: predicated region fallthrough
CT: control target
= control target key end

     0   :  { %vm29_vm0 = vcmask 1043456   ;;  %v584_v2 = vmov 0.0   ;;  %v585_v3 = vmov 0   ;;  %vm25_vm1 = vcmask 31744   ;;  %s656_s0 = inlined_call_operand.vmem [shape: f32[4,256], index: 0, kind: input, shape index: {}]   ;;  %s657_s1 = inlined_call_operand.vmem [shape: f32[8,1152], index: 1, kind: input, shape index: {}]   ;;  %s658_s2 = inlined_call_operand.vmem [shape: f32[8,640], index: 2, kind: input, shape index: {}]   ;;  %s659_s3 = inlined_call_operand.vmem [shape: f32[4], index: 3, kind: output, shape index: {}]  }
   0x1   :  { %v17_v0 = vld [vmem:[%s656_s0] sm:$0xff]  ;;  %98 = vmatprep.mubr.f32.mxu0 %v584_v2  ;;  %558 = vset.pattern.permute.xlu0 %v585_v3  ;;  %v16_v4 = vld [vmem:[%s657_s1 + $0x8] sm:$0xff]  ;;  %v111_v7 = vld [vmem:[%s657_s1 + $0x10] sm:$0xff] }
   0x2   :  { %v24_v1 = vcombine.high %v17_v0, %v17_v0  ;;  %v112_v5 = vld [vmem:[%s658_s2] sm:$0xf]  ;;  %20 = vperm.xlu0 %558, %v16_v4   ;;  %533 = vmatprep.subr.mxu1 %v584_v2 }
   0x3   :  { %v15_v6 = vld [vmem:[%s657_s1] sm:$0xff] }
   0x4   :  { %8 = vsyncpa [#allocation3], 0  ;;  %519 = vmatprep.subr.msk.mxu0 %vm29_vm0, %v24_v1  ;;  %534 = vmatpush3.msk.msra.mxu1 %vm29_vm0, %v112_v5  ;;  %vm586_vm2 = vmmov 0   ;;  %v192_v18 = vld [vmem:[%s657_s1 + $0x28] sm:$0xff]  ;;  %v191_v19 = vld [vmem:[%s657_s1 + $0x20] sm:$0xff]  ;;  %vm243_vm3 = vcmask 64512   ;;  %v196_v29 = vlaneseq }
   0x5   :  { %520 = vmatpush1.msk.msra.mxu0 %vm29_vm0, %v17_v0  ;;  %535 = vmatprep.mubr.msk.f32.mxu1 %vm586_vm2, %v584_v2  ;;  %v190_v20 = vld [vmem:[%s657_s1 + $0x18] sm:$0xff]  ;;  %v391_v26 = vld [vmem:[%s658_s2 + $0x20] sm:$0xff]  ;;  %vm400_vm5 = vcmask 359424   ;;  %v389_v3 = vld [vmem:[%s658_s2 + $0x10] sm:$0xff]  ;;  %vm449_vm9 = vcmask 89088   ;;  %vm480_vm10 = vcmask 7168  }
   0x6   :  { %521 = vmatmul.mubr.msk.f32.vlgmr.msra.gmra.mrb[0].mxu0 %vm25_vm1, %v15_v6  ;;  %536 = vmatmul.mubr.msk.f32.vlgmr.msra.gmra.mrb[0].mxu1 %vm25_vm1, %v111_v7  ;;  %vm411_vm4 = vcmp.gt.f32.partialorder %v391_v26, 0.0  ;;  %v197_v30 = vshrl.u32 %v196_v29, 7  ;;  %v524_v33 = vld [vmem:[%s657_s1 + $0x30] ss:$8 sm:$0x7]  ;;  %s587_s10 = smov 1.0  }
   0x7   :  { %538 = vmatprep.subr.mxu1 %v584_v2  ;;  %311 = vmatprep.mubr.f32.mxu0 %v584_v2  ;;  %v528_v27 = vsel %vm411_vm4, 1.0, %v584_v2  ;;  %v390_v40 = vld [vmem:[%s658_s2 + $0x18] sm:$0xff]  ;;  %s510_s20 = sshll.u32 %s659_s3, 4  ;;  %s511_s20 = int_to_ptr.vmem [resolvable:$true] %s510_s20 }
   0x8   :  { %540 = vmatprep.mubr.msk.f32.mxu1 %vm586_vm2, %v584_v2  ;;  %539 = vmatpush3.msra.mxu1 %v192_v18  ;;  %v414_v28 = vsel %vm400_vm5, %v528_v27, 0.0  ;;  %v198_v31 = vsub.s32 0, %v197_v30  ;;  %v206_v32 = vsub.s32 2, %v197_v30  ;;  %v202_v34 = vsub.s32 1, %v197_v30  ;;  %v388_v2 = vld [vmem:[%s658_s2 + $0x8] sm:$0xff]  ;;  %s570_s23 = scalar_lea.vmem %s511_s20, 16  ;;  %p575_p2 = scmp.lt.s32.totalorder %s511_s20, %s511_s20 }
   0x9   :  { %247 = vmatprep.subr.mxu0 %v191_v19  ;;  %p571_p1 = scmp.ne.s32.totalorder %s511_s20, %s570_s23  ;;  %p576_p3 = scmp.lt.s32.totalorder %s570_s23, %s570_s23 }
   0xa   :  { %248 = vmatpush1.msra.mxu0 %v190_v20  ;;  %v199_v35 = vrot.slane %v524_v33, %v198_v31  ;;  %v207_v36 = vrot.slane %v524_v33, %v206_v32  ;;  %v203_v37 = vrot.slane %v524_v33, %v202_v34 }
   0xb   :  { %p577_p4 = por %p576_p3, %p575_p2 }
   0xd   :  { %p578_p5 = pnand %p577_p4, %p571_p1 }
  0x81   :  { %v21_v8 = vpop.permute.xlu0 %20 }
  0xd9   :  { %v100_v9 = vpop.f32.mrb[0].mxu0  ;;  %v185_v16 = vpop.f32.mrb[0].mxu1 }
  0xda   :  { %v101_v10 = vadd.f32 %v100_v9, %v21_v8  ;;  %v102_v11 = vpop.f32.mrb[1].mxu0  ;;  %v537_v17 = vpop.f32.mrb[1].mxu1 }
  0xdb   :  { %v103_v12 = vadd.f32 %v102_v11, %v21_v8 }
  0xdc   :  { %v105_v13 = vmax.f32 %v101_v10, 0.0 }
  0xdd   :  { %v106_v14 = vmax.f32 %v103_v12, 0.0 }
  0xdf   :  { %v107_v15 = vadd.f32 %v106_v14, %v105_v13 }
  0xe1   :  { %108 = vadd.xlane.f32.xlu0 %v107_v15 }
  0xe5   :  { %415 = vadd.xlane.f32.xlu0 %v414_v28 }
 0x16e   :  { %v109_v21 = vpop.xlane.xlu0 %108 }
 0x16f   :  { %v110_v22 = vmul.f32 0.00390625, %v109_v21 }
 0x171   :  { %v186_v23 = vadd.f32 %v185_v16, %v110_v22 }
 0x173   :  { %v189_v24 = vmax.f32 %v186_v23, 0.0 }
 0x175   :  { %211 = vxpose.xlu1.b32.start.end [1/1] (short) (narrow) %v189_v24, 8 }
 0x1f5   :  { %v227_v25 = vpop.trf.xlu1 }
 0x1f6   :  { %525 = vmatmul.mubr.msk.f32.vlgmr.msra.gmra.mrb[2].mxu0 %vm243_vm3, %v227_v25  ;;  %541 = vmatmul.mubr.msk.f32.vlgmr.msra.gmra.mrb[2].mxu1 %vm243_vm3, %v227_v25 }
 0x2c9   :  { %v313_v38 = vpop.f32.mrb[2].mxu0  ;;  %v384_v39 = vpop.f32.mrb[2].mxu1 }
 0x2ca   :  { %v314_v41 = vadd.f32 %v313_v38, %v199_v35  ;;  %v385_v42 = vadd.f32 %v384_v39, %v207_v36  ;;  %v315_v43 = vpop.f32.mrb[3].mxu0  ;;  %v542_v44 = vpop.f32.mrb[3].mxu1 }
 0x2cb   :  { %v316_v45 = vadd.f32 %v315_v43, %v203_v37 }
 0x2cc   :  { %v466_v46 = vand.u32 2147483647, %v314_v41  ;;  %v392_v47 = vsub.f32 %v385_v42, %v390_v40  ;;  %v463_v12 = vmax.f32 %v314_v41, 0.0  ;;  %v464_v13 = vmul.f32 %v389_v3, %v314_v41 }
 0x2cd   :  { %v435_v48 = vand.u32 2147483647, %v316_v45  ;;  %v432_v6 = vmax.f32 %v316_v45, 0.0  ;;  %v433_v7 = vmul.f32 %v388_v2, %v316_v45 }
 0x2ce   :  { %v467_v49 = vsub.f32 0.0, %v466_v46  ;;  %v393_v50 = vmul.f32 %v392_v47, %v391_v26  ;;  %v465_v22 = vsub.f32 %v463_v12, %v464_v13  ;;  %v416_v26 = vpop.xlane.xlu0 %415 }
 0x2cf   :  { %v436_v51 = vsub.f32 0.0, %v435_v48  ;;  %v434_v18 = vsub.f32 %v432_v6, %v433_v7  ;;  %v417_v27 = vrot.slane %v416_v26, 4 }
 0x2d0   :  { %v468_v52 = vmul.f32 1.442695, %v467_v49  ;;  %v394_v53 = vand.u32 2147483647, %v393_v50  ;;  %v396_v54 = vmul.f32 0.5, %v393_v50 }
 0x2d1   :  { %v437_v55 = vmul.f32 1.442695, %v436_v51  ;;  %v418_v28 = vadd.f32 %v417_v27, %v416_v26 }
 0x2d2   :  { %560 = vpow2.f32 %v468_v52  ;;  %vm395_vm6 = vcmp.lt.f32.partialorder %v394_v53, 1.0  ;;  %v397_v56 = vmul.f32 %v396_v54, %v393_v50  ;;  %v527_v57 = vadd.f32 -0.5, %v394_v53 }
 0x2d3   :  { %562 = vpow2.f32 %v437_v55  ;;  %v419_v29 = vrot.slane %v418_v28, 2 }
 0x2d4   :  { %v399_v58 = vsel %vm395_vm6, %v397_v56, %v527_v57 }
 0x2d5   :  { %v401_v59 = vsel %vm400_vm5, %v399_v58, 0.0  ;;  %v420_v33 = vadd.f32 %v419_v29, %v418_v28 }
 0x2d6   :  { %402 = vadd.xlane.f32.xlu1 %v401_v59 }
 0x2d7   :  { %v421_v36 = vrot.slane %v420_v33, 1 }
 0x2d9   :  { %v422_v39 = vadd.f32 %v421_v36, %v420_v33 }
 0x2dc   :  { %v561_v60 = vpop.eup %560 }
 0x2dd   :  { %v563_v61 = vpop.eup %562  ;;  %v470_v62 = vadd.f32 1.0, %v561_v60  ;;  %v473_v1 = vmul.f32 -0.5, %v561_v60  ;;  %v476_v9 = vand.u32 2147483647, %v561_v60 }
 0x2de   :  { %v439_v63 = vadd.f32 1.0, %v563_v61  ;;  %v442_v0 = vmul.f32 -0.5, %v563_v61  ;;  %v445_v8 = vand.u32 2147483647, %v563_v61 }
 0x2df   :  { %564 = vlog2.f32 %v470_v62  ;;  %v474_v5 = vadd.f32 1.0, %v473_v1  ;;  %vm477_vm8 = vcmp.lt.f32.partialorder %v476_v9, 0.0004427343 }
 0x2e0   :  { %566 = vlog2.f32 %v439_v63  ;;  %v443_v4 = vadd.f32 1.0, %v442_v0  ;;  %vm446_vm7 = vcmp.lt.f32.partialorder %v445_v8, 0.0004427343 }
 0x2e1   :  { %v475_v17 = vmul.f32 %v561_v60, %v474_v5 }
 0x2e2   :  { %v444_v16 = vmul.f32 %v563_v61, %v443_v4 }
 0x2e9   :  { %v565_v10 = vpop.eup %564 }
 0x2ea   :  { %v567_v11 = vpop.eup %566  ;;  %v472_v14 = vmul.f32 0.6931472, %v565_v10 }
 0x2eb   :  { %v441_v15 = vmul.f32 0.6931472, %v567_v11 }
 0x2ec   :  { %v478_v20 = vsel %vm477_vm8, %v475_v17, %v472_v14 }
 0x2ed   :  { %v447_v19 = vsel %vm446_vm7, %v444_v16, %v441_v15  ;;  %v479_v24 = vadd.f32 %v478_v20, %v465_v22 }
 0x2ee   :  { %v448_v21 = vadd.f32 %v447_v19, %v434_v18 }
 0x2ef   :  { %v481_v25 = vsel %vm480_vm10, %v479_v24, 0.0 }
 0x2f0   :  { %v450_v23 = vsel %vm449_vm9, %v448_v21, 0.0 }
 0x2f1   :  { %451 = vadd.xlane.f32.xlu0 %v450_v23 }
 0x2f5   :  { %482 = vadd.xlane.f32.xlu0 %v481_v25 }
 0x363   :  { %v403_v30 = vpop.xlane.xlu1 %402 }
 0x364   :  { %v404_v31 = vrot.slane %v403_v30, 4 }
 0x366   :  { %v405_v32 = vadd.f32 %v404_v31, %v403_v30 }
 0x368   :  { %v406_v34 = vrot.slane %v405_v32, 2 }
 0x36a   :  { %v407_v35 = vadd.f32 %v406_v34, %v405_v32 }
 0x36c   :  { %v408_v37 = vrot.slane %v407_v35, 1 }
 0x36e   :  { %v409_v38 = vadd.f32 %v408_v37, %v407_v35 }
 0x370   :  { %543 = vpush %v409_v38 }
 0x371   :  { %545 = vpush %v422_v39 }
 0x37e   :  { %v452_v40 = vpop.xlane.xlu0 %451 }
 0x37f   :  { %v453_v42 = vrot.slane %v452_v40, 4 }
 0x381   :  { %v454_v44 = vadd.f32 %v453_v42, %v452_v40 }
 0x382   :  { %v483_v41 = vpop.xlane.xlu0 %482 }
 0x383   :  { %v484_v43 = vrot.slane %v483_v41, 4  ;;  %v455_v46 = vrot.slane %v454_v44, 2 }
 0x385   :  { %v485_v45 = vadd.f32 %v484_v43, %v483_v41  ;;  %v456_v49 = vadd.f32 %v455_v46, %v454_v44 }
 0x387   :  { %v486_v47 = vrot.slane %v485_v45, 2  ;;  %v457_v51 = vrot.slane %v456_v49, 1 }
 0x389   :  { %v487_v50 = vadd.f32 %v486_v47, %v485_v45  ;;  %v458_v54 = vadd.f32 %v457_v51, %v456_v49 }
 0x38b   :  { %v488_v52 = vrot.slane %v487_v50, 1 }
 0x38d   :  { %v489_v55 = vadd.f32 %v488_v52, %v487_v50 }
 0x3a1   :  { %s544_s2 = spop %543 }
 0x3a2   :  { %s546_s9 = spop %545 }
 0x3a3   :  { %s425_s11 = smax.f32 %s587_s10, %s546_s9  ;;  %p424_p0 = scmp.gt.f32.partialorder %s546_s9, 0.0 }
 0x3a4   :  { %v426_v48 = vstv %s425_s11 }
 0x3a5   :  { %568 = vrcp.f32 %v426_v48 }
 0x3af   :  { %v569_v53 = vpop.eup %568 }
 0x3b0   :  { %547 = vpush %v569_v53 }
 0x3b1   :  { %549 = vpush %v458_v54 }
 0x3b2   :  { %551 = vpush %v489_v55 }
 0x3e1   :  { %s548_s12 = spop %547 }
 0x3e2   :  { %s429_s13 = smul.f32 %s548_s12, %s544_s2  ;;  %s550_s14 = spop %549 }
 0x3e3   :  { %s462_s15 = smul.f32 0.011363637, %s550_s14  ;;  %s552_s16 = spop %551 }
 0x3e4   :  { %s430_s17 = smul.f32 4.0, %s429_s13 }
 0x3e5   :  { %497 = sst [smem:[#allocation2 + $0x1]] %s462_s15  ;;  %s493_s18 = smul.f32 0.125, %s552_s16 }
 0x3e6   :  { %s661_s17 = smov (!%p424_p0, %s430_s17), 0.0 }
 0x3e7   :  { %495 = sst [smem:[#allocation2]] %s493_s18 }
 0x3e8   :  { %499 = sst [smem:[#allocation2 + $0x2]] %s661_s17 }
 0x3e9   :  { %s500_s21 = sadd.f32 %s493_s18, %s462_s15 }
 0x3eb   :  { %s501_s22 = sadd.f32 %s500_s21, %s661_s17 }
 0x3ed   :  { %503 = sst [smem:[#allocation2 + $0x3]] %s501_s22 }
 0x3ee   :  { %581 = shalt.err (!%p578_p5)
}
 0x3ef   :  { %s588_s24 = smov [#allocation2]  }
 0x3f0   :  { %513 = dma.smem_to_vmem %s588_s24, 16, %s511_s20, [#allocation3]  }
 0x3f1   :  { %582 = dma.done.wait [#allocation3], 16  }
 0x3f2   :  { %583 = vsyncadd [#allocation3], 4294967280 }
 0x3f3   :  { %517 = sfence }
 0x3f4   :  { %518 = vsyncpa [#allocation3], 1 }

</bundles_post_ra>
